<compile_context>
chip_gen: v7x
topology: tpu7x:2x2x1
jax: 0.10.0
libtpu: 0.0.40
codegen_flags: <defaults>
</compile_context>

<pallas_src>
import jax
import jax.numpy as jnp
from jax.experimental import pallas as pl
from jax.experimental.pallas import tpu as pltpu

# ---------------- model dimensions (small, consistent with the forward) ----------------
B, C, H, W = 2, 4, 16, 16
HW = H * W                    # 256  -> lane axis
HIDDEN = 32
NUM_CLASSES = 10
LANES = 128                   # padded logits width (lane-dense store)
OUT_ROWS = 8                  # full (8, 128) output tile
SLAB_ROWS = 104               # packed-weight slab rows (multiple of 8)
# slab layout:
#   rows 0:4   cols 0:32    w1f            (C, HIDDEN)
#   rows 0:4   cols 32:64   w2.T           (C, HIDDEN)
#   rows 0:4   col  64      b2 (column)    (C,)
#   row  4     cols 0:32    w1s
#   row  5     cols 0:32    b1
#   row  6     cols 0:128   bo (zero padded)
#   rows 8:72  cols 0:8     block-diag projection Wblk[b*32+h, b*4+c] = wc[c, h]
#   rows 8:72  col  8       bc tiled per batch (column)
#   rows 72:104 cols 0:128  wo (HIDDEN, NUM_CLASSES zero padded to 128)


# ---------------- Pallas kernel: fused SNR-conditioned decoder + classifier ----------------
def decoder_kernel(x_ref, snr_ref, w_ref, out_ref):
    """x_ref:  (B*C, HW) = (8, 256) f32 VMEM   (spatial on the lane axis)
       snr_ref:(1, 1)             f32 SMEM
       w_ref:  (104, 128)         f32 VMEM packed weight slab
       out_ref:(8, 128)           f32 VMEM (logits padded to a full tile)."""
    snr = snr_ref[0, 0]
    x = x_ref[...]                                            # (8, 256)

    # ---- static views into the packed weight slab ----
    w1f = w_ref[0:C, 0:HIDDEN]                                # (4, 32)
    w2t = w_ref[0:C, 32:32 + HIDDEN]                          # (4, 32)  (= w2.T)
    b2c = w_ref[0:C, 64:65]                                   # (4, 1)
    w1s = w_ref[4:5, 0:HIDDEN]                                # (1, 32)
    b1 = w_ref[5:6, 0:HIDDEN]                                 # (1, 32)
    bo = w_ref[6:7, :]                                        # (1, 128) zero padded
    wblk = w_ref[8:8 + B * HIDDEN, 0:B * C]                   # (64, 8) block-diagonal
    bc2 = w_ref[8:8 + B * HIDDEN, 8:9]                        # (64, 1)
    wo = w_ref[72:72 + HIDDEN, :]                             # (32, 128) zero padded

    # ---- global average pool over spatial (lane) axis ----
    gap1 = jnp.mean(x, axis=-1, keepdims=True)                # (8, 1) -> gap1[4b+c]

    # ---- SNR-adaptive channel attention (tiny, VPU) ----
    s_cols = []
    for b in range(B):
        g_b = gap1[b * C:(b + 1) * C, :]                      # (4, 1)
        h_b = jnp.sum(g_b * w1f, axis=0, keepdims=True)       # (1, 32)
        h_b = jnp.maximum(h_b + snr * w1s + b1, 0.0)
        s_b = jnp.sum(h_b * w2t, axis=1, keepdims=True) + b2c  # (4, 1)
        s_cols.append(jax.nn.sigmoid(s_b))
    s_col = jnp.concatenate(s_cols, axis=0)                   # (8, 1)

    # ---- gate the feature map along channels (lane-dense) ----
    y = x * s_col                                             # (8, 256)

    # ---- 1x1 channel projection: single MXU matmul over both batches ----
    # z[b*32+h, x] = sum_c wc[c, h] * y[b*4+c, x]
    z = jnp.dot(wblk, y, preferred_element_type=jnp.float32)  # (64, 8)@(8, 256) -> (64, 256)
    z = jnp.maximum(z + bc2, 0.0)

    # ---- classifier head: GAP + linear ----
    gap2 = jnp.mean(z, axis=-1, keepdims=True)                # (64, 1)
    rows = []
    for b in range(B):
        g2_b = gap2[b * HIDDEN:(b + 1) * HIDDEN, :]           # (32, 1)
        rows.append(jnp.sum(g2_b * wo, axis=0, keepdims=True))  # (1, 128)
    logits = jnp.concatenate(rows, axis=0) + bo               # (B, 128)

    # full (8, 128) unmasked store; padding rows are zero
    out_ref[...] = jnp.concatenate(
        [logits, jnp.zeros((OUT_ROWS - B, LANES), jnp.float32)], axis=0)


# ---------------- parameter packing (done ONCE, outside the forward path) ----------------
def pack_params(params):
    """Pack the 9 tiny weights/biases into one (104, 128) f32 VMEM slab."""
    w1f, w1s, b1, w2, b2, wc, bc, wo, bo = params
    slab = jnp.zeros((SLAB_ROWS, LANES), jnp.float32)
    slab = slab.at[0:C, 0:HIDDEN].set(w1f)
    slab = slab.at[0:C, 32:32 + HIDDEN].set(w2.T)
    slab = slab.at[0:C, 64].set(b2.reshape(-1))
    slab = slab.at[4, 0:HIDDEN].set(w1s.reshape(-1))
    slab = slab.at[5, 0:HIDDEN].set(b1.reshape(-1))
    slab = slab.at[6, 0:NUM_CLASSES].set(bo.reshape(-1))
    wcT = wc.T                                                # (HIDDEN, C)
    for b in range(B):
        r0 = 8 + b * HIDDEN
        slab = slab.at[r0:r0 + HIDDEN, b * C:(b + 1) * C].set(wcT)
        slab = slab.at[r0:r0 + HIDDEN, 8].set(bc.reshape(-1))
    slab = slab.at[72:72 + HIDDEN, 0:NUM_CLASSES].set(wo)
    return slab


# ---------------- jitted forward wrapper ----------------
@jax.jit
def mamba_classify_forward(feature_nchw, snr, slab):
    """feature_nchw: (B, C, H, W) f32 ; snr: device scalar ; slab: pre-packed weights.
       Returns (B, NUM_CLASSES) logits."""
    Bb, Cc, Hh, Ww = feature_nchw.shape
    # NCHW -> (B*C, H*W): contiguous reshape, spatial on lanes, B*C fills sublanes.
    x = feature_nchw.reshape(Bb * Cc, Hh * Ww).astype(jnp.float32)
    snr_arr = jnp.reshape(jnp.asarray(snr, jnp.float32), (1, 1))

    out_pad = pl.pallas_call(
        decoder_kernel,
        out_shape=jax.ShapeDtypeStruct((OUT_ROWS, LANES), jnp.float32),
        in_specs=[
            pl.BlockSpec(memory_space=pltpu.MemorySpace.VMEM),   # feature (8, 256)
            pl.BlockSpec(memory_space=pltpu.MemorySpace.SMEM),   # SNR scalar
            pl.BlockSpec(memory_space=pltpu.MemorySpace.VMEM),   # packed weight slab
        ],
        out_specs=pl.BlockSpec(memory_space=pltpu.MemorySpace.VMEM),
    )(x, snr_arr, slab)
    return out_pad[:Bb, :NUM_CLASSES]


# ---------------- pure-JAX reference (for correctness check) ----------------
def reference_forward(feature_nchw, snr, params):
    w1f, w1s, b1, w2, b2, wc, bc, wo, bo = params
    Bb, Cc, Hh, Ww = feature_nchw.shape
    snr = jnp.asarray(snr, jnp.float32)
    x = jnp.transpose(feature_nchw, (0, 2, 3, 1)).reshape(Bb, Hh * Ww, Cc).astype(jnp.float32)
    gap = jnp.mean(x, axis=1)                                  # (B, C)
    h = jnp.maximum(gap @ w1f + snr * w1s + b1, 0.0)           # (B, HIDDEN)
    s = jax.nn.sigmoid(h @ w2 + b2)                            # (B, C)
    y = x * s[:, None, :]
    z = jnp.maximum(y @ wc + bc, 0.0)                          # (B, HW, HIDDEN)
    gap2 = jnp.mean(z, axis=1)                                 # (B, HIDDEN)
    return gap2 @ wo + bo                                      # (B, NUM_CLASSES)


def init_params(key):
    ks = jax.random.split(key, 9)
    sc = 0.1
    w1f = sc * jax.random.normal(ks[0], (C, HIDDEN), jnp.float32)
    w1s = sc * jax.random.normal(ks[1], (1, HIDDEN), jnp.float32)
    b1 = jnp.zeros((1, HIDDEN), jnp.float32)
    w2 = sc * jax.random.normal(ks[2], (HIDDEN, C), jnp.float32)
    b2 = jnp.zeros((1, C), jnp.float32)
    wc = sc * jax.random.normal(ks[3], (C, HIDDEN), jnp.float32)
    bc = sc * jax.random.normal(ks[4], (1, HIDDEN), jnp.float32)
    wo = sc * jax.random.normal(ks[5], (HIDDEN, NUM_CLASSES), jnp.float32)
    bo = jnp.zeros((1, NUM_CLASSES), jnp.float32)
    return (w1f, w1s, b1, w2, b2, wc, bc, wo, bo)


if __name__ == "__main__":
    key = jax.random.PRNGKey(0)
    k_x, k_p = jax.random.split(key)
    feature = jax.random.normal(k_x, (B, C, H, W), jnp.float32)   # PyTorch-style NCHW
    snr = jnp.asarray(10.0, jnp.float32)                          # device scalar SNR
    params = init_params(k_p)

    slab = pack_params(params)          # packed once, reused every call
    slab = jax.block_until_ready(slab)

    logits = mamba_classify_forward(feature, snr, slab)
    logits = jax.block_until_ready(logits)

    ref = reference_forward(feature, snr, params)
    assert logits.shape == (B, NUM_CLASSES)
    assert jnp.allclose(logits, ref, atol=1e-4, rtol=1e-4), (
        f"mismatch: max abs err {jnp.max(jnp.abs(logits - ref))}")
    print("KERNEL_OK")
</pallas_src>

<mosaic_0001>
module attributes {stable_mosaic.version = 11 : i64} {
  func.func @decoder_kernel(%arg0: memref<8x256xf32, #tpu.memory_space<vmem>>, %arg1: memref<1x1xf32, #tpu.memory_space<smem>>, %arg2: memref<104x128xf32, #tpu.memory_space<vmem>>, %arg3: memref<8x128xf32, #tpu.memory_space<vmem>>) attributes {dimension_semantics = [], scalar_prefetch = 0 : i64, scratch_operands = 0 : i64, tpu.core_type = #tpu.core_type<tc>} {
    %c0 = arith.constant 0 : index
    %c0_0 = arith.constant 0 : index
    %0 = memref.load %arg1[%c0, %c0_0] : memref<1x1xf32, #tpu.memory_space<smem>>
    %c0_1 = arith.constant 0 : index
    %c0_2 = arith.constant 0 : index
    %1 = vector.load %arg0[%c0_1, %c0_2] : memref<8x256xf32, #tpu.memory_space<vmem>>, vector<8x256xf32>
    %c0_3 = arith.constant 0 : index
    %c0_4 = arith.constant 0 : index
    %2 = vector.load %arg2[%c0_3, %c0_4] : memref<104x128xf32, #tpu.memory_space<vmem>>, vector<4x32xf32>
    %c0_5 = arith.constant 0 : index
    %c32 = arith.constant 32 : index
    %3 = vector.load %arg2[%c0_5, %c32] : memref<104x128xf32, #tpu.memory_space<vmem>>, vector<4x32xf32>
    %c0_6 = arith.constant 0 : index
    %c64 = arith.constant 64 : index
    %4 = vector.load %arg2[%c0_6, %c64] : memref<104x128xf32, #tpu.memory_space<vmem>>, vector<4x1xf32>
    %c4 = arith.constant 4 : index
    %c0_7 = arith.constant 0 : index
    %5 = vector.load %arg2[%c4, %c0_7] : memref<104x128xf32, #tpu.memory_space<vmem>>, vector<1x32xf32>
    %c5 = arith.constant 5 : index
    %c0_8 = arith.constant 0 : index
    %6 = vector.load %arg2[%c5, %c0_8] : memref<104x128xf32, #tpu.memory_space<vmem>>, vector<1x32xf32>
    %c6 = arith.constant 6 : index
    %c0_9 = arith.constant 0 : index
    %7 = vector.load %arg2[%c6, %c0_9] : memref<104x128xf32, #tpu.memory_space<vmem>>, vector<1x128xf32>
    %c8 = arith.constant 8 : index
    %c0_10 = arith.constant 0 : index
    %8 = vector.load %arg2[%c8, %c0_10] : memref<104x128xf32, #tpu.memory_space<vmem>>, vector<64x8xf32>
    %c8_11 = arith.constant 8 : index
    %c8_12 = arith.constant 8 : index
    %9 = vector.load %arg2[%c8_11, %c8_12] : memref<104x128xf32, #tpu.memory_space<vmem>>, vector<64x1xf32>
    %c72 = arith.constant 72 : index
    %c0_13 = arith.constant 0 : index
    %10 = vector.load %arg2[%c72, %c0_13] : memref<104x128xf32, #tpu.memory_space<vmem>>, vector<32x128xf32>
    %cst = arith.constant dense<0.000000e+00> : vector<8xf32>
    %11 = vector.multi_reduction <add>, %1, %cst [1] : vector<8x256xf32> to vector<8xf32>
    %12 = vector.shape_cast %11 : vector<8xf32> to vector<8x1xf32>
    %cst_14 = arith.constant 2.560000e+02 : f32
    %13 = vector.broadcast %cst_14 : f32 to vector<8x1xf32>
    %14 = arith.divf %12, %13 : vector<8x1xf32>
    %15 = vector.extract_strided_slice %14 {offsets = [0, 0], sizes = [4, 1], strides = [1, 1]} : vector<8x1xf32> to vector<4x1xf32>
    %16 = vector.broadcast %15 : vector<4x1xf32> to vector<4x32xf32>
    %17 = arith.mulf %16, %2 : vector<4x32xf32>
    %cst_15 = arith.constant dense<0.000000e+00> : vector<32xf32>
    %18 = vector.multi_reduction <add>, %17, %cst_15 [0] : vector<4x32xf32> to vector<32xf32>
    %19 = vector.shape_cast %18 : vector<32xf32> to vector<1x32xf32>
    %20 = vector.broadcast %0 : f32 to vector<1x32xf32>
    %21 = arith.mulf %20, %5 : vector<1x32xf32>
    %22 = arith.addf %19, %21 : vector<1x32xf32>
    %23 = arith.addf %22, %6 : vector<1x32xf32>
    %cst_16 = arith.constant 0.000000e+00 : f32
    %24 = vector.broadcast %cst_16 : f32 to vector<1x32xf32>
    %25 = arith.maximumf %23, %24 : vector<1x32xf32>
    %26 = vector.broadcast %25 : vector<1x32xf32> to vector<4x32xf32>
    %27 = arith.mulf %26, %3 : vector<4x32xf32>
    %cst_17 = arith.constant dense<0.000000e+00> : vector<4xf32>
    %28 = vector.multi_reduction <add>, %27, %cst_17 [1] : vector<4x32xf32> to vector<4xf32>
    %29 = vector.shape_cast %28 : vector<4xf32> to vector<4x1xf32>
    %30 = arith.addf %29, %4 : vector<4x1xf32>
    %31 = arith.negf %30 : vector<4x1xf32>
    %32 = math.exp %31 : vector<4x1xf32>
    %cst_18 = arith.constant 1.000000e+00 : f32
    %33 = vector.broadcast %cst_18 : f32 to vector<4x1xf32>
    %34 = arith.addf %33, %32 : vector<4x1xf32>
    %35 = arith.divf %33, %34 : vector<4x1xf32>
    %36 = vector.extract_strided_slice %14 {offsets = [4, 0], sizes = [4, 1], strides = [1, 1]} : vector<8x1xf32> to vector<4x1xf32>
    %37 = vector.broadcast %36 : vector<4x1xf32> to vector<4x32xf32>
    %38 = arith.mulf %37, %2 : vector<4x32xf32>
    %cst_19 = arith.constant dense<0.000000e+00> : vector<32xf32>
    %39 = vector.multi_reduction <add>, %38, %cst_19 [0] : vector<4x32xf32> to vector<32xf32>
    %40 = vector.shape_cast %39 : vector<32xf32> to vector<1x32xf32>
    %41 = vector.broadcast %0 : f32 to vector<1x32xf32>
    %42 = arith.mulf %41, %5 : vector<1x32xf32>
    %43 = arith.addf %40, %42 : vector<1x32xf32>
    %44 = arith.addf %43, %6 : vector<1x32xf32>
    %cst_20 = arith.constant 0.000000e+00 : f32
    %45 = vector.broadcast %cst_20 : f32 to vector<1x32xf32>
    %46 = arith.maximumf %44, %45 : vector<1x32xf32>
    %47 = vector.broadcast %46 : vector<1x32xf32> to vector<4x32xf32>
    %48 = arith.mulf %47, %3 : vector<4x32xf32>
    %cst_21 = arith.constant dense<0.000000e+00> : vector<4xf32>
    %49 = vector.multi_reduction <add>, %48, %cst_21 [1] : vector<4x32xf32> to vector<4xf32>
    %50 = vector.shape_cast %49 : vector<4xf32> to vector<4x1xf32>
    %51 = arith.addf %50, %4 : vector<4x1xf32>
    %52 = arith.negf %51 : vector<4x1xf32>
    %53 = math.exp %52 : vector<4x1xf32>
    %cst_22 = arith.constant 1.000000e+00 : f32
    %54 = vector.broadcast %cst_22 : f32 to vector<4x1xf32>
    %55 = arith.addf %54, %53 : vector<4x1xf32>
    %56 = arith.divf %54, %55 : vector<4x1xf32>
    %57 = tpu.concatenate %35, %56 in 0 : vector<4x1xf32>, vector<4x1xf32> -> vector<8x1xf32>
    %58 = vector.broadcast %57 : vector<8x1xf32> to vector<8x256xf32>
    %59 = arith.mulf %1, %58 : vector<8x256xf32>
    %cst_23 = arith.constant dense<0.000000e+00> : vector<64x256xf32>
    %60 = tpu.matmul %8, %59, %cst_23 {dimension_numbers = #tpu.dot_dimension_numbers<[1], [0], [0], [1], [0, 0, 1, 1], [], []>} : vector<64x8xf32>, vector<8x256xf32>, vector<64x256xf32> -> vector<64x256xf32>
    %61 = vector.broadcast %9 : vector<64x1xf32> to vector<64x256xf32>
    %62 = arith.addf %60, %61 : vector<64x256xf32>
    %cst_24 = arith.constant 0.000000e+00 : f32
    %63 = vector.broadcast %cst_24 : f32 to vector<64x256xf32>
    %64 = arith.maximumf %62, %63 : vector<64x256xf32>
    %cst_25 = arith.constant dense<0.000000e+00> : vector<64xf32>
    %65 = vector.multi_reduction <add>, %64, %cst_25 [1] : vector<64x256xf32> to vector<64xf32>
    %66 = vector.shape_cast %65 : vector<64xf32> to vector<64x1xf32>
    %cst_26 = arith.constant 2.560000e+02 : f32
    %67 = vector.broadcast %cst_26 : f32 to vector<64x1xf32>
    %68 = arith.divf %66, %67 : vector<64x1xf32>
    %69 = vector.extract_strided_slice %68 {offsets = [0, 0], sizes = [32, 1], strides = [1, 1]} : vector<64x1xf32> to vector<32x1xf32>
    %70 = vector.broadcast %69 : vector<32x1xf32> to vector<32x128xf32>
    %71 = arith.mulf %70, %10 : vector<32x128xf32>
    %cst_27 = arith.constant dense<0.000000e+00> : vector<128xf32>
    %72 = vector.multi_reduction <add>, %71, %cst_27 [0] : vector<32x128xf32> to vector<128xf32>
    %73 = vector.shape_cast %72 : vector<128xf32> to vector<1x128xf32>
    %74 = vector.extract_strided_slice %68 {offsets = [32, 0], sizes = [32, 1], strides = [1, 1]} : vector<64x1xf32> to vector<32x1xf32>
    %75 = vector.broadcast %74 : vector<32x1xf32> to vector<32x128xf32>
    %76 = arith.mulf %75, %10 : vector<32x128xf32>
    %cst_28 = arith.constant dense<0.000000e+00> : vector<128xf32>
    %77 = vector.multi_reduction <add>, %76, %cst_28 [0] : vector<32x128xf32> to vector<128xf32>
    %78 = vector.shape_cast %77 : vector<128xf32> to vector<1x128xf32>
    %79 = tpu.concatenate %73, %78 in 0 : vector<1x128xf32>, vector<1x128xf32> -> vector<2x128xf32>
    %80 = vector.broadcast %7 : vector<1x128xf32> to vector<2x128xf32>
    %81 = arith.addf %79, %80 : vector<2x128xf32>
    %cst_29 = arith.constant 0.000000e+00 : f32
    %82 = vector.broadcast %cst_29 : f32 to vector<6x128xf32>
    %83 = tpu.concatenate %81, %82 in 0 : vector<2x128xf32>, vector<6x128xf32> -> vector<8x128xf32>
    %c0_30 = arith.constant 0 : index
    %c0_31 = arith.constant 0 : index
    %84 = vector.load %arg3[%c0_30, %c0_31] : memref<8x128xf32, #tpu.memory_space<vmem>>, vector<8x128xf32>
    tpu.vector_store %arg3[%c0_30, %c0_31], %83 {strides = array<i32>} : memref<8x128xf32, #tpu.memory_space<vmem>>, vector<8x128xf32>,
    return
  }
}

</mosaic_0001>

<bundles_post_ra>
// kernel: mamba_classify_forward.1
= control target key start
LH: loop header
LB: loop body
LE: loop exit
PB: predicated region body
PF: predicated region fallthrough
CT: control target
= control target key end

     0   :  { %s401_s18 = smov 96   ;;  %vm40_vm0 = vcmask 257024   ;;  %v53_v23 = vlaneseq  ;;  %v402_v44 = vmov 64   ;;  %vm106_vm1 = vcmask 1043456   ;;  %s505_s0 = inlined_call_operand.vmem [shape: f32[8,256], index: 0, kind: input, shape index: {}]   ;;  %s506_s2 = inlined_call_operand.vmem [shape: f32[104,128], index: 2, kind: input, shape index: {}]   ;;  %s507_s1 = inlined_call_operand.<no memory space> [shape: f32[1,1], index: 1, kind: input, shape index: {}]   ;;  %s508_s3 = inlined_call_operand.vmem [shape: f32[8,128], index: 3, kind: output, shape index: {}]  }
   0x1   :  { %v428_v0 = vld [vmem:[%s505_s0] sm:$0xff]  ;;  %v433_v1 = vld [vmem:[%s505_s0 + $0x8] sm:$0xff]  ;;  %v48_v18 = vstv %s507_s1  ;;  %390 = vset.pattern.permute.xlu1 %v402_v44  ;;  %v403_v59 = vmov 0.0   ;;  %v23_v61 = vld [vmem:[%s506_s2 + $0x10] sm:$0xff]  ;;  %v404_v62 = vmov 8   ;;  %vm155_vm2 = vcmask 64512  }
   0x2   :  { %v34_v2 = vadd.f32 %v433_v1, %v428_v0  ;;  %v18_v3 = vld [vmem:[%s506_s2] sm:$0xf]  ;;  %v19_v17 = vld [vmem:[%s506_s2 + $0x4] sm:$0x1]  ;;  %v20_v27 = vld [vmem:[%s506_s2 + $0x5] sm:$0x1]  ;;  %236 = vmatprep.mubr.f32.mxu0 %v403_v59  ;;  %260 = vmatprep.mubr.f32.mxu1 %v403_v59 }
   0x3   :  { %v72_v4 = vrot.slane %v18_v3, 4  ;;  %v49_v22 = vmul.f32 %v48_v18, %v19_v17  ;;  %v54_v29 = vshrl.u32 %v53_v23, 7  ;;  %v22_v60 = vld [vmem:[%s506_s2 + $0x8] sm:$0xff]  ;;  %392 = vset.pattern.permute.xlu0 %v404_v62  ;;  %vm359_vm3 = vcmask 1040384  }
   0x4   :  { %35 = vadd.xlane.f32.xlu0 %v34_v2  ;;  %v26_v63 = vld [vmem:[%s506_s2 + $0x28] sm:$0xff]  ;;  %v24_v2 = vld [vmem:[%s506_s2 + $0x18] sm:$0xff]  ;;  %vm366_vm4 = vcmask 1041408  }
   0x5   :  { %v55_v34 = vsub.s32 0, %v54_v29 }
  0x1a   :  { %58 = vrot.lane.b32.xlu0 %v18_v3, %s401_s18 }
  0x1e   :  { %122 = vperm.xlu0 %392, %v23_v61  }
  0x22   :  { %127 = vperm.xlu0 %392, %v24_v2  }
  0x91   :  { %v36_v5 = vpop.xlane.xlu0 %35 }
  0x92   :  { %v38_v6 = vmul.f32 0.00390625, %v36_v5  ;;  %v28_v5 = vld [vmem:[%s506_s2 + $0x38] sm:$0xff] }
  0x94   :  { %v39_v7 = vmul.f32 %v38_v6, %v18_v3  ;;  %v74_v8 = vmul.f32 %v72_v4, %v38_v6  ;;  %v25_v4 = vld [vmem:[%s506_s2 + $0x20] sm:$0xff] }
  0x95   :  { %v59_v39 = vpop.permute.xlu0 %58  ;;  %132 = vperm.xlu0 %392, %v25_v4   ;;  %v29_v6 = vld [vmem:[%s506_s2 + $0x40] sm:$0xff] }
  0x96   :  { %v76_v9 = vrot.slane %v74_v8, 4  ;;  %v41_v10 = vsel %vm40_vm0, %v39_v7, 0.0 }
  0x97   :  { %v42_v11 = vrot.slane %v41_v10, 4 }
  0x98   :  { %v78_v12 = vsel %vm40_vm0, %v76_v9, 0.0 }
  0x99   :  { %v43_v13 = vadd.f32 %v42_v11, %v41_v10  ;;  %v79_v14 = vrot.slane %v78_v12, 4 }
  0x9b   :  { %v44_v15 = vrot.slane %v43_v13, 2  ;;  %v80_v16 = vadd.f32 %v79_v14, %v78_v12 }
  0x9d   :  { %v45_v19 = vadd.f32 %v44_v15, %v43_v13  ;;  %v81_v20 = vrot.slane %v80_v16, 2  ;;  %v123_v11 = vpop.permute.xlu0 %122 }
  0x9f   :  { %v46_v21 = vrot.slane %v45_v19, 1  ;;  %v82_v24 = vadd.f32 %v81_v20, %v80_v16 }
  0xa1   :  { %v47_v25 = vadd.f32 %v46_v21, %v45_v19  ;;  %v83_v26 = vrot.slane %v82_v24, 1  ;;  %v128_v23 = vpop.permute.xlu0 %127 }
  0xa3   :  { %v50_v28 = vadd.f32 %v49_v22, %v47_v25  ;;  %v84_v30 = vadd.f32 %v83_v26, %v82_v24 }
  0xa5   :  { %v51_v31 = vadd.f32 %v50_v28, %v20_v27  ;;  %v85_v32 = vadd.f32 %v84_v30, %v49_v22 }
  0xa7   :  { %v52_v33 = vmax.f32 %v51_v31, 0.0  ;;  %v86_v35 = vadd.f32 %v85_v32, %v20_v27 }
  0xa9   :  { %v87_v36 = vmax.f32 %v86_v35, 0.0  ;;  %v56_v37 = vrot.slane %v52_v33, %v55_v34 }
  0xab   :  { %v91_v38 = vrot.slane %v87_v36, %v55_v34  ;;  %v61_v41 = vmul.f32 %v59_v39, %v56_v37 }
  0xad   :  { %v92_v40 = vmul.f32 %v91_v38, %v59_v39  ;;  %v62_v43 = vsel %vm40_vm0, %v61_v41, 0.0 }
  0xaf   :  { %v93_v42 = vsel %vm40_vm0, %v92_v40, 0.0 }
  0xb0   :  { %94 = vadd.xlane.f32.xlu1 %v93_v42 }
  0xb4   :  { %63 = vadd.xlane.f32.xlu1 %v62_v43 }
 0x13d   :  { %v95_v45 = vpop.xlane.xlu1 %94 }
 0x13e   :  { %v96_v46 = vadd.f32 %v95_v45, %v18_v3 }
 0x140   :  { %v374_v47 = vmul.f32 -1.442695, %v96_v46 }
 0x141   :  { %v64_v48 = vpop.xlane.xlu1 %63 }
 0x142   :  { %393 = vpow2.f32 %v374_v47  ;;  %v65_v49 = vadd.f32 %v64_v48, %v18_v3  ;;  %v27_v3 = vld [vmem:[%s506_s2 + $0x30] sm:$0xff] }
 0x144   :  { %v373_v50 = vmul.f32 -1.442695, %v65_v49 }
 0x146   :  { %395 = vpow2.f32 %v373_v50 }
 0x14c   :  { %v394_v51 = vpop.eup %393 }
 0x14d   :  { %v100_v52 = vadd.f32 1.0, %v394_v51 }
 0x14f   :  { %397 = vrcp.f32 %v100_v52 }
 0x150   :  { %v396_v53 = vpop.eup %395 }
 0x151   :  { %v69_v54 = vadd.f32 1.0, %v396_v53  ;;  %v133_v53 = vpop.permute.xlu0 %132 }
 0x153   :  { %399 = vrcp.f32 %v69_v54 }
 0x159   :  { %v398_v55 = vpop.eup %397 }
 0x15a   :  { %v104_v56 = vrot.slane %v398_v55, 4 }
 0x15d   :  { %v400_v57 = vpop.eup %399 }
 0x15e   :  { %v107_v58 = vsel %vm106_vm1, %v400_v57, %v104_v56 }
 0x15f   :  { %110 = vperm.xlu1 %390, %v107_v58  }
 0x163   :  { %391 = vset.pattern.permute.xlu1 %v404_v62 }
 0x164   :  { %117 = vperm.xlu1 %391, %v22_v60  }
 0x168   :  { %137 = vperm.xlu1 %391, %v26_v63  }
 0x16c   :  { %142 = vperm.xlu1 %391, %v27_v3  }
 0x170   :  { %147 = vperm.xlu1 %391, %v28_v5  }
 0x174   :  { %152 = vperm.xlu1 %391, %v29_v6  }
 0x1de   :  { %v111_v7 = vpop.permute.xlu1 %110 }
 0x1df   :  { %v114_v8 = vmul.f32 %v111_v7, %v433_v1  ;;  %v113_v9 = vmul.f32 %v111_v7, %v428_v0 }
 0x1e1   :  { %172 = vmatprep.subr.mxu0 %v114_v8  ;;  %384 = vmatprep.subr.mxu1 %v114_v8 }
 0x1e2   :  { %173 = vmatpush1.msra.mxu0 %v113_v9  ;;  %385 = vmatpush1.msra.mxu1 %v113_v9 }
 0x1e3   :  { %375 = vmatmul.mubr.msk.f32.vlgmr.msra.gmra.mrb[0].mxu0 %vm155_vm2, %v22_v60  ;;  %379 = vmatmul.mubr.msk.f32.vlgmr.msra.gmra.mrb[0].mxu1 %vm155_vm2, %v26_v63  ;;  %v118_v0 = vpop.permute.xlu1 %117 }
 0x1e4   :  { %242 = vmatprep.mubr.f32.mxu0 %v403_v59  ;;  %266 = vmatprep.mubr.f32.mxu1 %v403_v59 }
 0x1e7   :  { %376 = vmatmul.mubr.msk.f32.gmra.mrb[2].mxu0 %vm155_vm2, %v23_v61  ;;  %380 = vmatmul.mubr.msk.f32.gmra.mrb[2].mxu1 %vm155_vm2, %v27_v3  ;;  %v138_v1 = vpop.permute.xlu1 %137 }
 0x1e8   :  { %248 = vmatprep.mubr.f32.mxu0 %v403_v59  ;;  %272 = vmatprep.mubr.f32.mxu1 %v403_v59 }
 0x1eb   :  { %377 = vmatmul.mubr.msk.f32.gmra.mrb[4].mxu0 %vm155_vm2, %v24_v2  ;;  %381 = vmatmul.mubr.msk.f32.gmra.mrb[4].mxu1 %vm155_vm2, %v28_v5  ;;  %v143_v10 = vpop.permute.xlu1 %142 }
 0x1ec   :  { %254 = vmatprep.mubr.f32.mxu0 %v403_v59  ;;  %278 = vmatprep.mubr.f32.mxu1 %v403_v59 }
 0x1ef   :  { %378 = vmatmul.mubr.msk.f32.gmra.mrb[6].mxu0 %vm155_vm2, %v25_v4  ;;  %382 = vmatmul.mubr.msk.f32.gmra.mrb[6].mxu1 %vm155_vm2, %v29_v6  ;;  %v148_v20 = vpop.permute.xlu1 %147 }
 0x1f3   :  { %v153_v50 = vpop.permute.xlu1 %152 }
 0x2b6   :  { %v238_v12 = vpop.f32.mrb[0].mxu0  ;;  %v262_v13 = vpop.f32.mrb[0].mxu1 }
 0x2b7   :  { %v239_v14 = vadd.f32 %v238_v12, %v118_v0  ;;  %v263_v15 = vadd.f32 %v262_v13, %v138_v1  ;;  %v240_v16 = vpop.f32.mrb[1].mxu0  ;;  %v264_v17 = vpop.f32.mrb[1].mxu1 }
 0x2b8   :  { %v241_v18 = vadd.f32 %v240_v16, %v118_v0  ;;  %v265_v19 = vadd.f32 %v264_v17, %v138_v1 }
 0x2b9   :  { %v285_v21 = vmax.f32 %v239_v14, 0.0  ;;  %v293_v22 = vmax.f32 %v263_v15, 0.0  ;;  %v31_v15 = vld [vmem:[%s506_s2 + $0x50] sm:$0xff] }
 0x2ba   :  { %v286_v24 = vmax.f32 %v241_v18, 0.0  ;;  %v294_v25 = vmax.f32 %v265_v19, 0.0  ;;  %v244_v26 = vpop.f32.mrb[2].mxu0  ;;  %v268_v27 = vpop.f32.mrb[2].mxu1  ;;  %v30_v18 = vld [vmem:[%s506_s2 + $0x48] sm:$0xff]  ;;  %v32_v19 = vld [vmem:[%s506_s2 + $0x58] sm:$0xff] }
 0x2bb   :  { %v245_v28 = vadd.f32 %v244_v26, %v123_v11  ;;  %v269_v29 = vadd.f32 %v268_v27, %v143_v10  ;;  %v246_v30 = vpop.f32.mrb[3].mxu0  ;;  %v270_v31 = vpop.f32.mrb[3].mxu1 }
 0x2bc   :  { %v247_v32 = vadd.f32 %v246_v30, %v123_v11  ;;  %v271_v33 = vadd.f32 %v270_v31, %v143_v10  ;;  %v301_v34 = vadd.f32 %v286_v24, %v285_v21  ;;  %v313_v35 = vadd.f32 %v294_v25, %v293_v22  ;;  %v33_v24 = vld [vmem:[%s506_s2 + $0x60] sm:$0xff] }
 0x2bd   :  { %v287_v36 = vmax.f32 %v245_v28, 0.0  ;;  %v295_v37 = vmax.f32 %v269_v29, 0.0 }
 0x2be   :  { %v288_v38 = vmax.f32 %v247_v32, 0.0  ;;  %v296_v39 = vmax.f32 %v271_v33, 0.0  ;;  %v250_v40 = vpop.f32.mrb[4].mxu0  ;;  %v274_v41 = vpop.f32.mrb[4].mxu1  ;;  %302 = vadd.xlane.f32.xlu0 %v301_v34 }
 0x2bf   :  { %v251_v42 = vadd.f32 %v250_v40, %v128_v23  ;;  %v275_v43 = vadd.f32 %v274_v41, %v148_v20  ;;  %v252_v44 = vpop.f32.mrb[5].mxu0  ;;  %v276_v45 = vpop.f32.mrb[5].mxu1 }
 0x2c0   :  { %v253_v46 = vadd.f32 %v252_v44, %v128_v23  ;;  %v277_v47 = vadd.f32 %v276_v45, %v148_v20  ;;  %v304_v48 = vadd.f32 %v288_v38, %v287_v36  ;;  %v316_v49 = vadd.f32 %v296_v39, %v295_v37 }
 0x2c1   :  { %v289_v51 = vmax.f32 %v251_v42, 0.0  ;;  %v297_v52 = vmax.f32 %v275_v43, 0.0 }
 0x2c2   :  { %v290_v54 = vmax.f32 %v253_v46, 0.0  ;;  %v298_v55 = vmax.f32 %v277_v47, 0.0  ;;  %v256_v56 = vpop.f32.mrb[6].mxu0  ;;  %v280_v57 = vpop.f32.mrb[6].mxu1  ;;  %314 = vadd.xlane.f32.xlu0 %v313_v35  ;;  %305 = vadd.xlane.f32.xlu1 %v304_v48 }
 0x2c3   :  { %v257_v58 = vadd.f32 %v256_v56, %v133_v53  ;;  %v281_v59 = vadd.f32 %v280_v57, %v153_v50  ;;  %v258_v60 = vpop.f32.mrb[7].mxu0  ;;  %v282_v61 = vpop.f32.mrb[7].mxu1 }
 0x2c4   :  { %v259_v62 = vadd.f32 %v258_v60, %v133_v53  ;;  %v283_v63 = vadd.f32 %v282_v61, %v153_v50  ;;  %v319_v2 = vadd.f32 %v298_v55, %v297_v52  ;;  %v307_v3 = vadd.f32 %v290_v54, %v289_v51  ;;  %v383_v53 = vld [vmem:[%s506_s2 + $0x6] ss:$0 sm:$0xff] }
 0x2c5   :  { %v291_v4 = vmax.f32 %v257_v58, 0.0  ;;  %v299_v5 = vmax.f32 %v281_v59, 0.0 }
 0x2c6   :  { %v292_v6 = vmax.f32 %v259_v62, 0.0  ;;  %v300_v7 = vmax.f32 %v283_v63, 0.0  ;;  %317 = vadd.xlane.f32.xlu0 %v316_v49  ;;  %320 = vadd.xlane.f32.xlu1 %v319_v2 }
 0x2c8   :  { %v322_v8 = vadd.f32 %v300_v7, %v299_v5  ;;  %v310_v9 = vadd.f32 %v292_v6, %v291_v4 }
 0x2ca   :  { %323 = vadd.xlane.f32.xlu1 %v322_v8  ;;  %308 = vadd.xlane.f32.xlu0 %v307_v3 }
 0x2ce   :  { %311 = vadd.xlane.f32.xlu0 %v310_v9 }
 0x34b   :  { %v303_v0 = vpop.xlane.xlu0 %302 }
 0x34c   :  { %v325_v20 = vmul.f32 0.00390625, %v303_v0 }
 0x34e   :  { %v333_v31 = vmul.f32 %v325_v20, %v30_v18 }
 0x34f   :  { %v306_v1 = vpop.xlane.xlu1 %305  ;;  %v315_v10 = vpop.xlane.xlu0 %314 }
 0x350   :  { %v329_v11 = vmul.f32 0.00390625, %v315_v10  ;;  %v326_v12 = vmul.f32 0.00390625, %v306_v1 }
 0x352   :  { %v346_v21 = vmul.f32 %v329_v11, %v30_v18  ;;  %v334_v23 = vmul.f32 %v326_v12, %v31_v15 }
 0x353   :  { %v321_v13 = vpop.xlane.xlu1 %320  ;;  %v318_v14 = vpop.xlane.xlu0 %317 }
 0x354   :  { %v331_v16 = vmul.f32 0.00390625, %v321_v13  ;;  %v330_v17 = vmul.f32 0.00390625, %v318_v14  ;;  %v337_v36 = vadd.f32 %v334_v23, %v333_v31 }
 0x356   :  { %v347_v22 = vmul.f32 %v330_v17, %v31_v15  ;;  %v348_v27 = vmul.f32 %v331_v16, %v32_v19 }
 0x357   :  { %v324_v25 = vpop.xlane.xlu1 %323  ;;  %v309_v26 = vpop.xlane.xlu0 %308 }
 0x358   :  { %v350_v28 = vadd.f32 %v347_v22, %v346_v21  ;;  %v332_v29 = vmul.f32 0.00390625, %v324_v25  ;;  %v327_v30 = vmul.f32 0.00390625, %v309_v26 }
 0x35a   :  { %v349_v32 = vmul.f32 %v332_v29, %v33_v24  ;;  %v351_v33 = vadd.f32 %v350_v28, %v348_v27  ;;  %v335_v34 = vmul.f32 %v327_v30, %v32_v19 }
 0x35b   :  { %v312_v35 = vpop.xlane.xlu0 %311 }
 0x35c   :  { %v352_v37 = vadd.f32 %v351_v33, %v349_v32  ;;  %v328_v38 = vmul.f32 0.00390625, %v312_v35  ;;  %v338_v40 = vadd.f32 %v337_v36, %v335_v34 }
 0x35e   :  { %v353_v39 = vrot.slane %v352_v37, 4  ;;  %v336_v41 = vmul.f32 %v328_v38, %v33_v24 }
 0x360   :  { %v354_v42 = vadd.f32 %v353_v39, %v352_v37  ;;  %v339_v43 = vadd.f32 %v338_v40, %v336_v41 }
 0x362   :  { %v355_v44 = vrot.slane %v354_v42, 2  ;;  %v340_v45 = vrot.slane %v339_v43, 4 }
 0x364   :  { %v356_v46 = vadd.f32 %v355_v44, %v354_v42  ;;  %v341_v47 = vadd.f32 %v340_v45, %v339_v43 }
 0x366   :  { %v342_v48 = vrot.slane %v341_v47, 2  ;;  %v357_v49 = vrot.slane %v356_v46, 1 }
 0x368   :  { %v343_v50 = vadd.f32 %v342_v48, %v341_v47  ;;  %v358_v52 = vadd.f32 %v357_v49, %v356_v46 }
 0x36a   :  { %v344_v51 = vrot.slane %v343_v50, 1 }
 0x36c   :  { %v345_v54 = vadd.f32 %v344_v51, %v343_v50 }
 0x36e   :  { %v360_v55 = vsel %vm359_vm3, %v345_v54, %v358_v52 }
 0x36f   :  { %v365_v56 = vadd.f32 %v383_v53, %v360_v55 }
 0x371   :  { %v367_v57 = vsel %vm366_vm4, %v365_v56, 0.0 }
 0x372   :  { %368 = vst [vmem:[%s508_s3] sm:$0xff] %v367_v57 }

</bundles_post_ra>
